<compile_context>
chip_gen: v5e
topology: v5e:2x2
jax: 0.10.0
libtpu: 0.0.40
codegen_flags: <defaults>
</compile_context>

<pallas_src>
import functools

import jax
import jax.numpy as jnp
from jax.experimental import pallas as pl
from jax.experimental.pallas import tpu as pltpu

HIDDEN1 = 128
HIDDEN2 = 64
H2_PAD = 128      # hidden2 zero-padded to a full lane width (exact: padded weights/bias are 0)
LANE = 128
SUBLANE = 8
_MIN_SPLIT_BATCH = 512   # above this, force >=2 grid steps so both v7x TensorCores get work


def _cdiv(a, b):
    return (a + b - 1) // b


def _round_up(n, m):
    return _cdiv(n, m) * m


def _detect_vmem_capacity():
    """Per-generation VMEM size (v5e/v6e: 128 MiB, v7x: 64 MiB); conservative fallback."""
    try:
        cap = getattr(pltpu.get_tpu_info(), "vmem_capacity_bytes", None)
        if cap:
            return int(cap)
    except Exception:
        pass
    return 64 << 20  # assume v7x-sized VMEM if detection fails


_VMEM_CAPACITY = _detect_vmem_capacity()
_BIG_VMEM = _VMEM_CAPACITY >= (100 << 20)                  # True on v5e/v6e, False on v7x
TILE_B_CAP = 16384 if _BIG_VMEM else 8192                  # sweepable batch-tile ceiling
_VMEM_TARGET = (56 << 20) if _BIG_VMEM else (22 << 20)     # per-step working-set target
_VMEM_LIMIT_CEIL = (96 << 20) if _BIG_VMEM else (32 << 20)


def qnetwork_kernel(x_ref, w1_ref, b1_ref, w2_ref, b2_ref, w3_ref, b3_ref, out_ref):
    """One batch tile of the MLP: MXU matmuls with f32 accumulation, ReLUs on the VPU.

    The third layer is computed at a padded 128-lane width (MXU-friendly); only the first
    out_size columns are stored, so the HBM output stays narrow.
    """
    x = x_ref[...].astype(w1_ref.dtype)                                       # (TB, in)
    h1 = jnp.dot(x, w1_ref[...], preferred_element_type=jnp.float32) + b1_ref[...]
    h1 = jnp.maximum(h1, 0.0)                                                 # (TB, 128)
    h2 = jnp.dot(h1.astype(w2_ref.dtype), w2_ref[...],
                 preferred_element_type=jnp.float32) + b2_ref[...]
    h2 = jnp.maximum(h2, 0.0)                                                 # (TB, 128)
    q = jnp.dot(h2.astype(w3_ref.dtype), w3_ref[...],
                preferred_element_type=jnp.float32) + b3_ref[...]             # (TB, 128)
    n_out = out_ref.shape[1]
    out_ref[...] = q[:, :n_out].astype(out_ref.dtype)                         # (TB, out_size)


def prepare_params(params, param_dtype=jnp.float32):
    """One-time (outside the hot path) transpose + pad of the PyTorch-layout weights.

    - weights go to (in, out) layout so the kernel computes x @ W^T + b;
    - hidden2 is zero-padded 64 -> 128 (lane-full h2, exact math);
    - the output head is zero-padded to 128 lanes (MXU-friendly; sliced off in-kernel).
    Use param_dtype=jnp.bfloat16 in the RL loop for MXU-native throughput (accumulation
    stays f32 in the kernel); the bf16 path will not be bit-exact vs the f32 reference.
    """
    out_size = int(params["w3"].shape[0])
    out_pad = _round_up(out_size, LANE)

    w1t = params["w1"].T.astype(param_dtype)                            # (in, 128)
    b1 = params["b1"].reshape(1, -1).astype(param_dtype)                # (1, 128)
    w2t = jnp.zeros((HIDDEN1, H2_PAD), param_dtype).at[:, :HIDDEN2].set(
        params["w2"].T.astype(param_dtype))                             # (128, 128)
    b2 = jnp.zeros((1, H2_PAD), param_dtype).at[:, :HIDDEN2].set(
        params["b2"].astype(param_dtype))                               # (1, 128)
    w3t = jnp.zeros((H2_PAD, out_pad), param_dtype).at[:HIDDEN2, :out_size].set(
        params["w3"].T.astype(param_dtype))                             # (128, 128)
    b3 = jnp.zeros((1, out_pad), param_dtype).at[:, :out_size].set(
        params["b3"].astype(param_dtype))                               # (1, 128)
    return (w1t, b1, w2t, b2, w3t, b3), out_size


@functools.partial(jax.jit, static_argnames=("out_size",))
def qnetwork_forward(x, prepared, out_size):
    """x: (B, input_size). prepared: output of prepare_params. Returns (B, out_size) f32."""
    w1t, b1, w2t, b2, w3t, b3 = prepared
    B, in_f = x.shape
    x_bytes = x.dtype.itemsize
    param_bytes = sum(a.size * a.dtype.itemsize for a in prepared)

    # --- batch-tile selection -------------------------------------------------------------
    # Per-row VMEM cost: double-buffered x + out tiles plus the three f32 (TB,128) temps.
    per_row_bytes = 2 * in_f * x_bytes + 2 * out_size * 4 + 3 * LANE * 4
    fit_rows = max((_VMEM_TARGET - 2 * param_bytes) // per_row_bytes, SUBLANE)
    tile_cap = max((min(TILE_B_CAP, int(fit_rows)) // SUBLANE) * SUBLANE, SUBLANE)

    num_tiles = _cdiv(B, tile_cap)
    if B >= _MIN_SPLIT_BATCH:
        num_tiles = max(num_tiles, 2)          # >=2 grid steps -> both TCs used on v7x
    tile_b = _round_up(_cdiv(B, num_tiles), SUBLANE)
    b_pad = num_tiles * tile_b                 # padding bounded by ~8 * num_tiles rows
    if b_pad != B:
        x = jnp.pad(x, ((0, b_pad - B), (0, 0)))
    grid = (num_tiles,)

    # --- VMEM / cost bookkeeping ------------------------------------------------------------
    vmem_est = tile_b * per_row_bytes + 2 * param_bytes
    vmem_limit = int(min(max(2 * vmem_est, 4 << 20), _VMEM_LIMIT_CEIL))
    flops = 2 * b_pad * (in_f * HIDDEN1 + HIDDEN1 * H2_PAD + H2_PAD * LANE)
    bytes_accessed = b_pad * in_f * x_bytes + b_pad * out_size * 4 + param_bytes

    out = pl.pallas_call(
        qnetwork_kernel,
        out_shape=jax.ShapeDtypeStruct((b_pad, out_size), jnp.float32),
        grid=grid,
        in_specs=[
            pl.BlockSpec((tile_b, in_f), lambda i: (i, 0)),     # x: tiled over batch
            pl.BlockSpec(w1t.shape, lambda i: (0, 0)),          # params: VMEM-resident
            pl.BlockSpec(b1.shape, lambda i: (0, 0)),
            pl.BlockSpec(w2t.shape, lambda i: (0, 0)),
            pl.BlockSpec(b2.shape, lambda i: (0, 0)),
            pl.BlockSpec(w3t.shape, lambda i: (0, 0)),
            pl.BlockSpec(b3.shape, lambda i: (0, 0)),
        ],
        # Narrow (b_pad, out_size) output: block last dim equals the full array dim, so the
        # masked store is legal and HBM writeback shrinks ~20x vs the padded 128-lane layout.
        out_specs=pl.BlockSpec((tile_b, out_size), lambda i: (i, 0)),
        compiler_params=pltpu.CompilerParams(
            dimension_semantics=("parallel",),   # shards batch tiles across TCs on v7x
            vmem_limit_bytes=vmem_limit,
        ),
        cost_estimate=pl.CostEstimate(
            flops=int(flops), transcendentals=0, bytes_accessed=int(bytes_accessed)),
    )(x, w1t, b1, w2t, b2, w3t, b3)

    return out[:B] if b_pad != B else out


def qnetwork_apply(x, prepared, out_size, min_pallas_batch=256):
    """Dispatcher: tiny acting batches use plain XLA dots (kernel launch overhead dominates);
    replay-buffer-sized batches use the Pallas kernel."""
    if x.shape[0] < min_pallas_batch:
        w1t, b1, w2t, b2, w3t, b3 = prepared
        h = jnp.maximum(jnp.dot(x, w1t) + b1, 0.0)
        h = jnp.maximum(jnp.dot(h, w2t) + b2, 0.0)
        return (jnp.dot(h, w3t) + b3)[:, :out_size]
    return qnetwork_forward(x, prepared, out_size)


def init_params(key, input_size, output_size):
    """Deterministic init mimicking PyTorch nn.Linear (uniform +/- 1/sqrt(fan_in))."""
    sizes = [(HIDDEN1, input_size), (HIDDEN2, HIDDEN1), (output_size, HIDDEN2)]
    params = {}
    for i, (out_f, in_f) in enumerate(sizes, start=1):
        key, kw, kb = jax.random.split(key, 3)
        bound = 1.0 / jnp.sqrt(in_f)
        params[f"w{i}"] = jax.random.uniform(
            kw, (out_f, in_f), jnp.float32, minval=-bound, maxval=bound)
        params[f"b{i}"] = jax.random.uniform(
            kb, (out_f,), jnp.float32, minval=-bound, maxval=bound)
    return params


def reference_forward(x, params):
    """Pure-JAX reference matching PyTorch semantics."""
    h = jnp.maximum(x @ params["w1"].T + params["b1"], 0.0)
    h = jnp.maximum(h @ params["w2"].T + params["b2"], 0.0)
    return h @ params["w3"].T + params["b3"]


if __name__ == "__main__":
    key = jax.random.PRNGKey(0)
    input_size, output_size = 32, 6   # e.g. bomberman-style agent: 6 actions

    kx1, kx2, kp = jax.random.split(key, 3)
    params = init_params(kp, input_size, output_size)
    # Prepare (transpose/pad) params ONCE, outside the hot path.  f32 here so the check vs
    # the PyTorch-equivalent reference is exact; use jnp.bfloat16 in an RL training loop.
    prepared, out_size = prepare_params(params, jnp.float32)

    # 1) Small acting-style batch (forced through the Pallas path to exercise the kernel).
    x_small = jax.random.normal(kx1, (2, input_size), jnp.float32)
    q_small = jax.block_until_ready(qnetwork_forward(x_small, prepared, out_size))
    assert q_small.shape == (2, output_size)
    assert jnp.allclose(q_small, reference_forward(x_small, params), atol=1e-5, rtol=1e-5), \
        "mismatch vs reference (small batch)"

    # 2) Ragged medium batch: exercises the multi-step grid (>=2 tiles) and remainder padding.
    x_big = jax.random.normal(kx2, (515, input_size), jnp.float32)
    q_big = jax.block_until_ready(qnetwork_forward(x_big, prepared, out_size))
    assert q_big.shape == (515, output_size)
    assert jnp.allclose(q_big, reference_forward(x_big, params), atol=1e-4, rtol=1e-4), \
        "mismatch vs reference (tiled batch)"

    print("KERNEL_OK")
</pallas_src>

<mosaic_0001>
module attributes {stable_mosaic.version = 11 : i64} {
  func.func @qnetwork_kernel(%arg0: i32, %arg1: memref<8x32xf32, #tpu.memory_space<vmem>>, %arg2: memref<32x128xf32, #tpu.memory_space<vmem>>, %arg3: memref<1x128xf32, #tpu.memory_space<vmem>>, %arg4: memref<128x128xf32, #tpu.memory_space<vmem>>, %arg5: memref<1x128xf32, #tpu.memory_space<vmem>>, %arg6: memref<128x128xf32, #tpu.memory_space<vmem>>, %arg7: memref<1x128xf32, #tpu.memory_space<vmem>>, %arg8: memref<8x6xf32, #tpu.memory_space<vmem>>) attributes {dimension_semantics = [#tpu.dimension_semantics<parallel>], iteration_bounds = array<i64: 1>, scalar_prefetch = 0 : i64, scratch_operands = 0 : i64, tpu.core_type = #tpu.core_type<tc>, window_params = [{transform_indices = @transform_0, window_bounds = array<i64: 8, 32>}, {pipeline_mode = #tpu.pipeline_mode<synchronous>, transform_indices = @transform_1, window_bounds = array<i64: 32, 128>}, {pipeline_mode = #tpu.pipeline_mode<synchronous>, transform_indices = @transform_2, window_bounds = array<i64: 1, 128>}, {pipeline_mode = #tpu.pipeline_mode<synchronous>, transform_indices = @transform_3, window_bounds = array<i64: 128, 128>}, {pipeline_mode = #tpu.pipeline_mode<synchronous>, transform_indices = @transform_4, window_bounds = array<i64: 1, 128>}, {pipeline_mode = #tpu.pipeline_mode<synchronous>, transform_indices = @transform_5, window_bounds = array<i64: 128, 128>}, {pipeline_mode = #tpu.pipeline_mode<synchronous>, transform_indices = @transform_6, window_bounds = array<i64: 1, 128>}, {transform_indices = @transform_7, window_bounds = array<i64: 8, 6>}]} {
    %c0 = arith.constant 0 : index
    %c0_0 = arith.constant 0 : index
    %0 = vector.load %arg1[%c0, %c0_0] : memref<8x32xf32, #tpu.memory_space<vmem>>, vector<8x32xf32>
    %c0_1 = arith.constant 0 : index
    %c0_2 = arith.constant 0 : index
    %1 = vector.load %arg2[%c0_1, %c0_2] : memref<32x128xf32, #tpu.memory_space<vmem>>, vector<32x128xf32>
    %cst = arith.constant dense<0.000000e+00> : vector<8x128xf32>
    %2 = tpu.matmul %0, %1, %cst {dimension_numbers = #tpu.dot_dimension_numbers<[1], [0], [0], [1], [0, 0, 1, 1], [], []>} : vector<8x32xf32>, vector<32x128xf32>, vector<8x128xf32> -> vector<8x128xf32>
    %c0_3 = arith.constant 0 : index
    %c0_4 = arith.constant 0 : index
    %3 = vector.load %arg3[%c0_3, %c0_4] : memref<1x128xf32, #tpu.memory_space<vmem>>, vector<1x128xf32>
    %4 = vector.broadcast %3 : vector<1x128xf32> to vector<8x128xf32>
    %5 = arith.addf %2, %4 : vector<8x128xf32>
    %cst_5 = arith.constant 0.000000e+00 : f32
    %6 = vector.broadcast %cst_5 : f32 to vector<8x128xf32>
    %7 = arith.maximumf %5, %6 : vector<8x128xf32>
    %c0_6 = arith.constant 0 : index
    %c0_7 = arith.constant 0 : index
    %8 = vector.load %arg4[%c0_6, %c0_7] : memref<128x128xf32, #tpu.memory_space<vmem>>, vector<128x128xf32>
    %cst_8 = arith.constant dense<0.000000e+00> : vector<8x128xf32>
    %9 = tpu.matmul %7, %8, %cst_8 {dimension_numbers = #tpu.dot_dimension_numbers<[1], [0], [0], [1], [0, 0, 1, 1], [], []>} : vector<8x128xf32>, vector<128x128xf32>, vector<8x128xf32> -> vector<8x128xf32>
    %c0_9 = arith.constant 0 : index
    %c0_10 = arith.constant 0 : index
    %10 = vector.load %arg5[%c0_9, %c0_10] : memref<1x128xf32, #tpu.memory_space<vmem>>, vector<1x128xf32>
    %11 = vector.broadcast %10 : vector<1x128xf32> to vector<8x128xf32>
    %12 = arith.addf %9, %11 : vector<8x128xf32>
    %cst_11 = arith.constant 0.000000e+00 : f32
    %13 = vector.broadcast %cst_11 : f32 to vector<8x128xf32>
    %14 = arith.maximumf %12, %13 : vector<8x128xf32>
    %c0_12 = arith.constant 0 : index
    %c0_13 = arith.constant 0 : index
    %15 = vector.load %arg6[%c0_12, %c0_13] : memref<128x128xf32, #tpu.memory_space<vmem>>, vector<128x128xf32>
    %cst_14 = arith.constant dense<0.000000e+00> : vector<8x128xf32>
    %16 = tpu.matmul %14, %15, %cst_14 {dimension_numbers = #tpu.dot_dimension_numbers<[1], [0], [0], [1], [0, 0, 1, 1], [], []>} : vector<8x128xf32>, vector<128x128xf32>, vector<8x128xf32> -> vector<8x128xf32>
    %c0_15 = arith.constant 0 : index
    %c0_16 = arith.constant 0 : index
    %17 = vector.load %arg7[%c0_15, %c0_16] : memref<1x128xf32, #tpu.memory_space<vmem>>, vector<1x128xf32>
    %18 = vector.broadcast %17 : vector<1x128xf32> to vector<8x128xf32>
    %19 = arith.addf %16, %18 : vector<8x128xf32>
    %20 = vector.extract_strided_slice %19 {offsets = [0, 0], sizes = [8, 6], strides = [1, 1]} : vector<8x128xf32> to vector<8x6xf32>
    %c0_17 = arith.constant 0 : index
    %c0_18 = arith.constant 0 : index
    %21 = vector.load %arg8[%c0_17, %c0_18] : memref<8x6xf32, #tpu.memory_space<vmem>>, vector<8x6xf32>
    tpu.vector_store %arg8[%c0_17, %c0_18], %20 {strides = array<i32>} : memref<8x6xf32, #tpu.memory_space<vmem>>, vector<8x6xf32>,
    return
  }
  func.func @transform_0(%arg0: i32) -> (i32, i32) {
    %c0_i32 = arith.constant 0 : i32
    %c0_i32_0 = arith.constant 0 : i32
    return %arg0, %c0_i32 : i32, i32
  }
  func.func @transform_1(%arg0: i32) -> (i32, i32) {
    %c0_i32 = arith.constant 0 : i32
    %c0_i32_0 = arith.constant 0 : i32
    %c0_i32_1 = arith.constant 0 : i32
    return %c0_i32, %c0_i32_0 : i32, i32
  }
  func.func @transform_2(%arg0: i32) -> (i32, i32) {
    %c0_i32 = arith.constant 0 : i32
    %c0_i32_0 = arith.constant 0 : i32
    %c0_i32_1 = arith.constant 0 : i32
    return %c0_i32, %c0_i32_0 : i32, i32
  }
  func.func @transform_3(%arg0: i32) -> (i32, i32) {
    %c0_i32 = arith.constant 0 : i32
    %c0_i32_0 = arith.constant 0 : i32
    %c0_i32_1 = arith.constant 0 : i32
    return %c0_i32, %c0_i32_0 : i32, i32
  }
  func.func @transform_4(%arg0: i32) -> (i32, i32) {
    %c0_i32 = arith.constant 0 : i32
    %c0_i32_0 = arith.constant 0 : i32
    %c0_i32_1 = arith.constant 0 : i32
    return %c0_i32, %c0_i32_0 : i32, i32
  }
  func.func @transform_5(%arg0: i32) -> (i32, i32) {
    %c0_i32 = arith.constant 0 : i32
    %c0_i32_0 = arith.constant 0 : i32
    %c0_i32_1 = arith.constant 0 : i32
    return %c0_i32, %c0_i32_0 : i32, i32
  }
  func.func @transform_6(%arg0: i32) -> (i32, i32) {
    %c0_i32 = arith.constant 0 : i32
    %c0_i32_0 = arith.constant 0 : i32
    %c0_i32_1 = arith.constant 0 : i32
    return %c0_i32, %c0_i32_0 : i32, i32
  }
  func.func @transform_7(%arg0: i32) -> (i32, i32) {
    %c0_i32 = arith.constant 0 : i32
    %c0_i32_0 = arith.constant 0 : i32
    return %arg0, %c0_i32 : i32, i32
  }
}

</mosaic_0001>

<bundles_post_ra>
// kernel: qnetwork_forward.1
= control target key start
LH: loop header
LB: loop body
LE: loop exit
PB: predicated region body
PF: predicated region fallthrough
CT: control target
= control target key end

     0   :  { %12 = vsyncpa [#allocation3], 0  ;;  %s350_s0 = inlined_call_operand.vmem [shape: f32[8,32], index: 0, kind: input, shape index: {}]   ;;  %s351_s1 = inlined_call_operand.hbm [shape: f32[32,128], index: 1, kind: input, shape index: {}]   ;;  %s352_s2 = inlined_call_operand.vmem [shape: f32[1,128], index: 2, kind: input, shape index: {}]   ;;  %s353_s3 = inlined_call_operand.hbm [shape: f32[128,128], index: 3, kind: input, shape index: {}]   ;;  %s354_s4 = inlined_call_operand.vmem [shape: f32[1,128], index: 4, kind: input, shape index: {}]   ;;  %s355_s5 = inlined_call_operand.hbm [shape: f32[128,128], index: 5, kind: input, shape index: {}]   ;;  %s356_s6 = inlined_call_operand.vmem [shape: f32[1,128], index: 6, kind: input, shape index: {}]   ;;  %s357_s7 = inlined_call_operand.vmem [shape: f32[8,6], index: 7, kind: output, shape index: {}]  }
   0x1   :  { %13 = vsyncpa [#allocation5], 0  ;;  %s35_s26 = sshll.u32 %s353_s3, 4  ;;  %s281_s27 = smov [#allocation4]   ;;  %s36_s26 = int_to_ptr.hbm [resolvable:$true] %s35_s26 }
   0x2   :  { %s37_s28 = sshll.u32 %s281_s27, 4  ;;  %s20_s8 = sshll.u32 %s351_s1, 4  ;;  %s38_s28 = int_to_ptr.vmem [resolvable:$true] %s37_s28  ;;  %s21_s8 = int_to_ptr.hbm [resolvable:$true] %s20_s8 }
   0x3   :  { %s282_s9 = smov 128   ;;  %s283_s10 = smov 8  }
   0x4   :  { %43 = dma.hbm_to_vmem [thread:$0]  %s36_s26, 2048, %s38_s28, [#allocation5], %s282_s9, %s282_s9, %s283_s10  }
   0x5   :  { %s284_s11 = smov [#allocation2]   ;;  %s50_s15 = sshll.u32 %s355_s5, 4  ;;  %s51_s15 = int_to_ptr.hbm [resolvable:$true] %s50_s15 }
   0x6   :  { %s22_s12 = sshll.u32 %s284_s11, 4  ;;  %s285_s3 = smov [#allocation6]   ;;  %s23_s12 = int_to_ptr.vmem [resolvable:$true] %s22_s12 }
   0x7   :  { %28 = dma.hbm_to_vmem [thread:$0]  %s21_s8, 512, %s23_s12, [#allocation3], %s282_s9, %s282_s9, %s283_s10  }
   0x8   :  { %s52_s16 = sshll.u32 %s285_s3, 4  ;;  %s53_s16 = int_to_ptr.vmem [resolvable:$true] %s52_s16 }
   0x9   :  { %58 = dma.hbm_to_vmem [thread:$0]  %s51_s15, 2048, %s53_s16, [#allocation5], %s282_s9, %s282_s9, %s283_s10  }
   0xa   :  { %277 = dma.done.wait [#allocation3], 512  }
   0xb   :  { %278 = vsyncadd [#allocation3], 4294966784 }
   0xc   :  { %279 = dma.done.wait [#allocation5], 4096  }
   0xd   :  { %280 = vsyncadd [#allocation5], 4294963200  ;;  %v77_v0 = vld [vmem:[#allocation2 + $0x18] sm:$0xff]  ;;  %v76_v1 = vld [vmem:[#allocation2 + $0x10] sm:$0xff]  ;;  %vm82_vm0 = vcmask 261120   ;;  %vm188_vm1 = vcmask 48128  }
   0xe   :  { %98 = vmatpush.msra.mxu0 %v77_v0  ;;  %v122_v2 = vld [vmem:[#allocation4 + $0x78] sm:$0xff]  ;;  %v75_v3 = vld [vmem:[#allocation2 + $0x8] sm:$0xff]  ;;  %v121_v4 = vld [vmem:[#allocation4 + $0x70] sm:$0xff] }
   0xf   :  { %127 = vmatpush.msra.mxu1 %v122_v2  ;;  %v120_v5 = vld [vmem:[#allocation4 + $0x68] sm:$0xff]  ;;  %v74_v6 = vld [vmem:[#allocation2] sm:$0xff]  ;;  %v118_v9 = vld [vmem:[#allocation4 + $0x58] sm:$0xff] }
  0x10   :  { %99 = vmatpush.msra.mxu0 %v76_v1  ;;  %v73_v7 = vld [vmem:[%s350_s0] sm:$0xff]  ;;  %v117_v10 = vld [vmem:[#allocation4 + $0x50] sm:$0xff]  ;;  %v116_v11 = vld [vmem:[#allocation4 + $0x48] sm:$0xff] }
  0x11   :  { %128 = vmatpush.msra.mxu1 %v121_v4  ;;  %v119_v8 = vld [vmem:[#allocation4 + $0x60] sm:$0xff]  ;;  %v114_v13 = vld [vmem:[#allocation4 + $0x38] sm:$0xff]  ;;  %v113_v14 = vld [vmem:[#allocation4 + $0x30] sm:$0xff] }
  0x12   :  { %100 = vmatpush.msra.mxu0 %v75_v3  ;;  %v115_v12 = vld [vmem:[#allocation4 + $0x40] sm:$0xff]  ;;  %v112_v15 = vld [vmem:[#allocation4 + $0x28] sm:$0xff]  ;;  %v110_v17 = vld [vmem:[#allocation4 + $0x18] sm:$0xff] }
  0x13   :  { %129 = vmatpush.msra.mxu1 %v120_v5  ;;  %v111_v16 = vld [vmem:[#allocation4 + $0x20] sm:$0xff]  ;;  %v109_v18 = vld [vmem:[#allocation4 + $0x10] sm:$0xff]  ;;  %v108_v19 = vld [vmem:[#allocation4 + $0x8] sm:$0xff] }
  0x14   :  { %101 = vmatpush.msra.mxu0 %v74_v6  ;;  %v107_v20 = vld [vmem:[#allocation4] sm:$0xff]  ;;  %v163_v21 = vld [vmem:[#allocation6 + $0x78] sm:$0xff]  ;;  %v162_v22 = vld [vmem:[#allocation6 + $0x70] sm:$0xff] }
  0x15   :  { %196 = vmatmul.msk.f32.vlgmr.msra.gmra.mxu0 %vm82_vm0, %v73_v7  ;;  %130 = vmatpush.msra.mxu1 %v119_v8  ;;  %v161_v23 = vld [vmem:[#allocation6 + $0x68] sm:$0xff]  ;;  %v160_v24 = vld [vmem:[#allocation6 + $0x60] sm:$0xff]  ;;  %v159_v25 = vld [vmem:[#allocation6 + $0x58] sm:$0xff] }
  0x16   :  { %168 = vmatpush.msra.mxu2 %v163_v21  ;;  %v158_v26 = vld [vmem:[#allocation6 + $0x50] sm:$0xff]  ;;  %v157_v27 = vld [vmem:[#allocation6 + $0x48] sm:$0xff]  ;;  %v156_v28 = vld [vmem:[#allocation6 + $0x40] sm:$0xff] }
  0x17   :  { %131 = vmatpush.msra.mxu1 %v118_v9  ;;  %v155_v29 = vld [vmem:[#allocation6 + $0x38] sm:$0xff]  ;;  %v154_v30 = vld [vmem:[#allocation6 + $0x30] sm:$0xff]  ;;  %v153_v31 = vld [vmem:[#allocation6 + $0x28] sm:$0xff] }
  0x18   :  { %169 = vmatpush.msra.mxu2 %v162_v22  ;;  %v152_v32 = vld [vmem:[#allocation6 + $0x20] sm:$0xff]  ;;  %v151_v33 = vld [vmem:[#allocation6 + $0x18] sm:$0xff]  ;;  %v150_v38 = vld [vmem:[#allocation6 + $0x10] sm:$0xff] }
  0x19   :  { %132 = vmatpush.msra.mxu1 %v117_v10  ;;  %v202_v34 = vld [vmem:[%s352_s2] ss:$0 sm:$0xff]  ;;  %v149_v39 = vld [vmem:[#allocation6 + $0x8] sm:$0xff] }
  0x1a   :  { %170 = vmatpush.msra.mxu2 %v161_v23  ;;  %v148_v40 = vld [vmem:[#allocation6] sm:$0xff] }
  0x1b   :  { %133 = vmatpush.msra.mxu1 %v116_v11  ;;  %v203_v41 = vld [vmem:[%s354_s4] ss:$0 sm:$0xff] }
  0x1c   :  { %171 = vmatpush.msra.mxu2 %v160_v24  ;;  %v204_v45 = vld [vmem:[%s356_s6] ss:$0 sm:$0xff] }
  0x1d   :  { %134 = vmatpush.msra.mxu1 %v115_v12 }
  0x1e   :  { %172 = vmatpush.msra.mxu2 %v159_v25 }
  0x1f   :  { %135 = vmatpush.msra.mxu1 %v114_v13 }
  0x20   :  { %173 = vmatpush.msra.mxu2 %v158_v26 }
  0x21   :  { %136 = vmatpush.msra.mxu1 %v113_v14 }
  0x22   :  { %174 = vmatpush.msra.mxu2 %v157_v27 }
  0x23   :  { %137 = vmatpush.msra.mxu1 %v112_v15 }
  0x24   :  { %175 = vmatpush.msra.mxu2 %v156_v28 }
  0x25   :  { %138 = vmatpush.msra.mxu1 %v111_v16 }
  0x26   :  { %176 = vmatpush.msra.mxu2 %v155_v29 }
  0x27   :  { %139 = vmatpush.msra.mxu1 %v110_v17 }
  0x28   :  { %177 = vmatpush.msra.mxu2 %v154_v30 }
  0x29   :  { %140 = vmatpush.msra.mxu1 %v109_v18 }
  0x2a   :  { %178 = vmatpush.msra.mxu2 %v153_v31 }
  0x2b   :  { %141 = vmatpush.msra.mxu1 %v108_v19 }
  0x2c   :  { %179 = vmatpush.msra.mxu2 %v152_v32 }
  0x2d   :  { %142 = vmatpush.msra.mxu1 %v107_v20 }
  0x2e   :  { %180 = vmatpush.msra.mxu2 %v151_v33 }
  0x30   :  { %181 = vmatpush.msra.mxu2 %v150_v38 }
  0x32   :  { %182 = vmatpush.msra.mxu2 %v149_v39 }
  0x34   :  { %183 = vmatpush.msra.mxu2 %v148_v40 }
  0x92   :  { %v103_v35 = vpop.f32.mrf.mxu0 }
  0x93   :  { %v104_v36 = vadd.f32 %v202_v34, %v103_v35 }
  0x95   :  { %v106_v37 = vmax.f32 %v104_v36, 0.0 }
  0x97   :  { %143 = vmatmul.f32.vlgmr.msra.gmra.mxu1 %v106_v37 }
 0x114   :  { %v144_v42 = vpop.f32.mrf.mxu1 }
 0x115   :  { %v145_v43 = vadd.f32 %v203_v41, %v144_v42 }
 0x117   :  { %v147_v44 = vmax.f32 %v145_v43, 0.0 }
 0x119   :  { %184 = vmatmul.f32.vlgmr.msra.gmra.mxu2 %v147_v44 }
 0x19c   :  { %v185_v46 = vpop.f32.mrf.mxu2 }
 0x19d   :  { %v186_v47 = vadd.f32 %v204_v45, %v185_v46 }
 0x19f   :  { %189 = vst.msk [vmem:[%s357_s7] sm:$0xff] %vm188_vm1, %v186_v47 }
 0x1a0   :  { %194 = vsyncpa [#allocation3], 1 }
 0x1a1   :  { %195 = vsyncpa [#allocation5], 1 }

</bundles_post_ra>
